<compile_context>
chip_gen: v6e
topology: v6e:2x2x1
jax: 0.10.0
libtpu: 0.0.40
codegen_flags: <defaults>
</compile_context>

<pallas_src>
import math

import jax
import jax.numpy as jnp
from jax import lax
from jax.experimental import pallas as pl
from jax.experimental.pallas import tpu as pltpu

_LANES = 128
_SUBLANES = 8
# Conservative per-kernel VMEM budget: fits v5e's 16 MiB default scoped VMEM
# (v6e / v7x default to 32 MiB scoped, so this is safe on every generation).
_VMEM_BUDGET_BYTES = 12 * 1024 * 1024


def _round_up(x, m):
    return ((x + m - 1) // m) * m


def _linear_kernel(x_ref, w_ref, b_ref, o_ref, acc_ref):
    # x_ref: (tile_n, tile_d)  w_ref: (k_pad, tile_d)  b_ref: (1, k_pad)
    # o_ref: (tile_n, k_pad)   acc_ref: VMEM scratch (tile_n, k_pad) f32
    d = pl.program_id(1)

    @pl.when(d == 0)
    def _():
        acc_ref[...] = jnp.zeros_like(acc_ref)

    acc_ref[...] += lax.dot_general(
        x_ref[...],
        w_ref[...],
        dimension_numbers=(((1,), (1,)), ((), ())),  # contract D of x with D of W
        preferred_element_type=jnp.float32,
    )

    @pl.when(d == pl.num_programs(1) - 1)
    def _():
        o_ref[...] = (acc_ref[...] + b_ref[...]).astype(o_ref.dtype)


def prepare_params(weight, bias):
    """Pad (n_classes, D) weight / (n_classes,) bias to 128 output lanes ONCE.

    Padded class columns have zero weight/bias, contribute nothing, and are
    sliced off in the forward. Call this once at init and reuse the padded
    params for every forward (hoisted out of the per-call path).
    """
    n_classes, in_features = weight.shape
    k_pad = _round_up(max(n_classes, _LANES), _LANES)
    w_pad = jnp.zeros((k_pad, in_features), weight.dtype).at[:n_classes, :].set(weight)
    b_pad = jnp.zeros((1, k_pad), jnp.float32).at[0, :n_classes].set(
        bias.astype(jnp.float32)
    )
    return w_pad, b_pad


def _pick_tile_d(in_features, k_pad, tile_n, itemsize):
    """Full-D if resident blocks fit the VMEM budget, else the largest
    128-aligned divisor of D that does (keeps the contraction exact)."""

    def vmem_bytes(td):
        x_b = 2 * tile_n * td * itemsize      # double-buffered x stream
        w_b = 2 * k_pad * td * itemsize       # W block (double-buffer allocation)
        o_b = 2 * tile_n * k_pad * 4          # double-buffered f32 output
        acc_b = tile_n * k_pad * 4            # accumulator scratch
        b_b = 2 * k_pad * 4
        return x_b + w_b + o_b + acc_b + b_b

    if vmem_bytes(in_features) <= _VMEM_BUDGET_BYTES:
        return in_features
    best = None
    d = _LANES
    while d <= in_features:
        if in_features % d == 0 and vmem_bytes(d) <= _VMEM_BUDGET_BYTES:
            best = d
        d += _LANES
    if best is not None:
        return best
    # TODO(synk): no 128-aligned divisor of D fits the budget; fall back to
    # full-D (for huge, prime-ish D raise vmem_limit_bytes instead).
    return in_features


def softmax_classifier_forward(images, w_pad, b_pad, n_classes, *, tile_n=1024):
    """images: (N, C, H, W); w_pad/b_pad from prepare_params; returns (N, n_classes) logits."""
    n = images.shape[0]
    k_pad, in_features = w_pad.shape

    x = images.reshape(n, in_features)  # glue: flatten NCHW (no HBM pad copy)

    # Batch tiling: multiple of 8 sublanes, and >= 2 grid steps when possible
    # so both TensorCores are used on v7x megacore.
    tile_n = min(tile_n, _round_up(pl.cdiv(n, 2), _SUBLANES))
    tile_n = max(tile_n, _SUBLANES)
    grid_n = pl.cdiv(n, tile_n)  # non-dividing grid: Pallas bounds the edge block

    tile_d = _pick_tile_d(in_features, k_pad, tile_n, x.dtype.itemsize)
    grid_d = in_features // tile_d  # exact: tile_d divides (or equals) in_features

    out = pl.pallas_call(
        _linear_kernel,
        out_shape=jax.ShapeDtypeStruct((n, k_pad), jnp.float32),
        grid=(grid_n, grid_d),
        in_specs=[
            # x: streamed over batch and D (double-buffered by Pallas).
            pl.BlockSpec((tile_n, tile_d), lambda i, d: (i, d)),
            # W: streamed over D only; constant over the batch axis.
            pl.BlockSpec((k_pad, tile_d), lambda i, d: (0, d)),
            # bias: constant block index -> VMEM-resident.
            pl.BlockSpec((1, k_pad), lambda i, d: (0, 0)),
        ],
        out_specs=pl.BlockSpec((tile_n, k_pad), lambda i, d: (i, 0)),
        scratch_shapes=[pltpu.VMEM((tile_n, k_pad), jnp.float32)],
        compiler_params=pltpu.CompilerParams(
            dimension_semantics=("parallel", "arbitrary"),
        ),
    )(x, w_pad, b_pad)

    # Drop the padded (zero-weight) class columns; the batch dim was never
    # padded so no row slice is needed.
    return out[:, :n_classes]


def init_params(key, im_size, n_classes):
    """Deterministic init mimicking nn.Linear default (uniform +/- 1/sqrt(fan_in))."""
    c, h, w = im_size
    in_features = c * h * w
    k_w, k_b = jax.random.split(key)
    bound = 1.0 / math.sqrt(in_features)
    weight = jax.random.uniform(
        k_w, (n_classes, in_features), jnp.float32, -bound, bound
    )
    bias = jax.random.uniform(k_b, (n_classes,), jnp.float32, -bound, bound)
    return weight, bias


if __name__ == "__main__":
    key = jax.random.PRNGKey(0)
    k_img, k_param = jax.random.split(key)

    # Small shapes consistent with the module: batch=2, channels=4, 16x16 images, 10 classes.
    im_size = (4, 16, 16)
    n_classes = 10
    batch = 2
    images = jax.random.normal(k_img, (batch, *im_size), dtype=jnp.float32)

    weight, bias = init_params(k_param, im_size, n_classes)
    w_pad, b_pad = prepare_params(weight, bias)  # pad once, reuse every forward

    scores = softmax_classifier_forward(images, w_pad, b_pad, n_classes)
    jax.block_until_ready(scores)

    # Reference check in plain JAX.
    ref = images.reshape(batch, -1) @ weight.T + bias
    assert scores.shape == (batch, n_classes)
    assert jnp.allclose(scores, ref, atol=1e-4, rtol=1e-4)

    print("KERNEL_OK")
</pallas_src>

<mosaic_0001>
module attributes {stable_mosaic.version = 11 : i64} {
  func.func @_linear_kernel(%arg0: i32, %arg1: i32, %arg2: memref<8x1024xf32, #tpu.memory_space<vmem>>, %arg3: memref<128x1024xf32, #tpu.memory_space<vmem>>, %arg4: memref<1x128xf32, #tpu.memory_space<vmem>>, %arg5: memref<8x128xf32, #tpu.memory_space<vmem>>, %arg6: memref<8x128xf32, #tpu.memory_space<vmem>>) attributes {dimension_semantics = [#tpu.dimension_semantics<parallel>, #tpu.dimension_semantics<arbitrary>], iteration_bounds = array<i64: 1, 1>, scalar_prefetch = 0 : i64, scratch_operands = 1 : i64, tpu.core_type = #tpu.core_type<tc>, window_params = [{transform_indices = @transform_0, window_bounds = array<i64: 8, 1024>}, {transform_indices = @transform_1, window_bounds = array<i64: 128, 1024>}, {pipeline_mode = #tpu.pipeline_mode<synchronous>, transform_indices = @transform_2, window_bounds = array<i64: 1, 128>}, {transform_indices = @transform_3, window_bounds = array<i64: 8, 128>}]} {
    %c0_i32 = arith.constant 0 : i32
    %0 = arith.cmpi eq, %arg1, %c0_i32 : i32
    %1 = arith.extui %0 : i1 to i32
    %c0_i32_0 = arith.constant 0 : i32
    %2 = arith.cmpi ne, %1, %c0_i32_0 : i32
    scf.if %2 {
      %cst_10 = arith.constant 0.000000e+00 : f32
      %12 = vector.broadcast %cst_10 : f32 to vector<8x128xf32>
      %c0_11 = arith.constant 0 : index
      %c0_12 = arith.constant 0 : index
      %13 = vector.load %arg6[%c0_11, %c0_12] : memref<8x128xf32, #tpu.memory_space<vmem>>, vector<8x128xf32>
      tpu.vector_store %arg6[%c0_11, %c0_12], %12 {strides = array<i32>} : memref<8x128xf32, #tpu.memory_space<vmem>>, vector<8x128xf32>,
    } else {
    }
    %c0 = arith.constant 0 : index
    %c0_1 = arith.constant 0 : index
    %3 = vector.load %arg6[%c0, %c0_1] : memref<8x128xf32, #tpu.memory_space<vmem>>, vector<8x128xf32>
    %c0_2 = arith.constant 0 : index
    %c0_3 = arith.constant 0 : index
    %4 = vector.load %arg2[%c0_2, %c0_3] : memref<8x1024xf32, #tpu.memory_space<vmem>>, vector<8x1024xf32>
    %c0_4 = arith.constant 0 : index
    %c0_5 = arith.constant 0 : index
    %5 = vector.load %arg3[%c0_4, %c0_5] : memref<128x1024xf32, #tpu.memory_space<vmem>>, vector<128x1024xf32>
    %cst = arith.constant dense<0.000000e+00> : vector<8x128xf32>
    %6 = tpu.matmul %4, %5, %cst {dimension_numbers = #tpu.dot_dimension_numbers<[1], [1], [0], [0], [0, 0, 1, 0], [], []>} : vector<8x1024xf32>, vector<128x1024xf32>, vector<8x128xf32> -> vector<8x128xf32>
    %7 = arith.addf %3, %6 : vector<8x128xf32>
    %c0_6 = arith.constant 0 : index
    %c0_7 = arith.constant 0 : index
    %8 = vector.load %arg6[%c0_6, %c0_7] : memref<8x128xf32, #tpu.memory_space<vmem>>, vector<8x128xf32>
    tpu.vector_store %arg6[%c0_6, %c0_7], %7 {strides = array<i32>} : memref<8x128xf32, #tpu.memory_space<vmem>>, vector<8x128xf32>,
    %c0_i32_8 = arith.constant 0 : i32
    %9 = arith.cmpi eq, %arg1, %c0_i32_8 : i32
    %10 = arith.extui %9 : i1 to i32
    %c0_i32_9 = arith.constant 0 : i32
    %11 = arith.cmpi ne, %10, %c0_i32_9 : i32
    scf.if %11 {
      %c0_10 = arith.constant 0 : index
      %c0_11 = arith.constant 0 : index
      %12 = vector.load %arg6[%c0_10, %c0_11] : memref<8x128xf32, #tpu.memory_space<vmem>>, vector<8x128xf32>
      %c0_12 = arith.constant 0 : index
      %c0_13 = arith.constant 0 : index
      %13 = vector.load %arg4[%c0_12, %c0_13] : memref<1x128xf32, #tpu.memory_space<vmem>>, vector<1x128xf32>
      %14 = vector.broadcast %13 : vector<1x128xf32> to vector<8x128xf32>
      %15 = arith.addf %12, %14 : vector<8x128xf32>
      %c0_14 = arith.constant 0 : index
      %c0_15 = arith.constant 0 : index
      %16 = vector.load %arg5[%c0_14, %c0_15] : memref<8x128xf32, #tpu.memory_space<vmem>>, vector<8x128xf32>
      tpu.vector_store %arg5[%c0_14, %c0_15], %15 {strides = array<i32>} : memref<8x128xf32, #tpu.memory_space<vmem>>, vector<8x128xf32>,
    } else {
    }
    return
  }
  func.func @transform_0(%arg0: i32, %arg1: i32) -> (i32, i32) {
    %c0_i32 = arith.constant 0 : i32
    return %arg0, %arg1 : i32, i32
  }
  func.func @transform_1(%arg0: i32, %arg1: i32) -> (i32, i32) {
    %c0_i32 = arith.constant 0 : i32
    %c0_i32_0 = arith.constant 0 : i32
    return %c0_i32, %arg1 : i32, i32
  }
  func.func @transform_2(%arg0: i32, %arg1: i32) -> (i32, i32) {
    %c0_i32 = arith.constant 0 : i32
    %c0_i32_0 = arith.constant 0 : i32
    %c0_i32_1 = arith.constant 0 : i32
    return %c0_i32, %c0_i32_0 : i32, i32
  }
  func.func @transform_3(%arg0: i32, %arg1: i32) -> (i32, i32) {
    %c0_i32 = arith.constant 0 : i32
    %c0_i32_0 = arith.constant 0 : i32
    return %arg0, %c0_i32 : i32, i32
  }
}

</mosaic_0001>

<bundles_post_ra>
// kernel: tpu_custom_call.1
= control target key start
LH: loop header
LB: loop body
LE: loop exit
PB: predicated region body
PF: predicated region fallthrough
CT: control target
= control target key end

     0   :  { %8 = vsyncpa [#allocation4], 0  ;;  %s759_s0 = inlined_call_operand.hbm [shape: f32[2,1024], index: 0, kind: input, shape index: {}]   ;;  %s760_s1 = inlined_call_operand.hbm [shape: f32[128,1024], index: 1, kind: input, shape index: {}]   ;;  %s761_s2 = inlined_call_operand.vmem [shape: f32[1,128], index: 2, kind: input, shape index: {}]   ;;  %s762_s3 = inlined_call_operand.hbm [shape: f32[2,128], index: 3, kind: output, shape index: {}]  }
   0x1   :  { %9 = vsyncpa [#allocation7], 0 }
   0x2   :  { %10 = vsyncpa [#allocation5], 0 }
   0x3   :  { %15 = vsyncadd [#allocation4], 768  ;;  %s675_s12 = smov [#allocation3]  }
   0x4   :  { %s16_s13 = sshll.u32 %s675_s12, 4  ;;  %s17_s13 = int_to_ptr.vmem [resolvable:$true] %s16_s13 }
   0x5   :  { %s617_s14 = scalar_lea.vmem %s17_s13, 256  ;;  %s621_s15 = scalar_lea.vmem %s17_s13, 1024 }
   0x6   :  { %p618_p0 = scmp.ne.s32.totalorder %s17_s13, %s617_s14  ;;  %p622_p1 = scmp.lt.s32.totalorder %s17_s13, %s17_s13 }
   0x7   :  { %p623_p2 = scmp.lt.s32.totalorder %s621_s15, %s617_s14 }
   0x9   :  { %p624_p3 = por %p623_p2, %p622_p1 }
   0xb   :  { %p625_p4 = pnand %p624_p3, %p618_p0 }
   0xd   :  { %628 = shalt.err (!%p625_p4)
}
   0xe   :  { %s676_s16 = smov 256   ;;  %s677_s17 = smov 16  }
   0xf   :  { %22 = dma.hbm_to_vmem [thread:$0]  %s759_s0, 256, %s17_s13, [#allocation4], %s676_s16, %s676_s16, %s677_s17  }
  0x10   :  { %s678_s20 = smov [#allocation6]  }
  0x11   :  { %s28_s21 = sshll.u32 %s678_s20, 4  ;;  %s29_s21 = int_to_ptr.vmem [resolvable:$true] %s28_s21 }
  0x12   :  { %s637_s22 = scalar_lea.vmem %s29_s21, 16384  ;;  %p642_p6 = scmp.lt.s32.totalorder %s29_s21, %s29_s21 }
  0x13   :  { %p638_p5 = scmp.ne.s32.totalorder %s29_s21, %s637_s22  ;;  %p643_p7 = scmp.lt.s32.totalorder %s637_s22, %s637_s22 }
  0x15   :  { %p644_p8 = por %p643_p7, %p642_p6 }
  0x17   :  { %p645_p9 = pnand %p644_p8, %p638_p5 }
  0x19   :  { %648 = shalt.err (!%p645_p9)
}
  0x1a   :  { %s679_s23 = smov 1024   ;;  %s680_s24 = smov 64  }
  0x1b   :  { %34 = dma.hbm_to_vmem [thread:$0]  %s760_s1, 16384, %s29_s21, [#allocation7], %s679_s23, %s679_s23, %s680_s24  }
  0x1c   :  { %669 = dma.done.wait [#allocation4], 1024  }
  0x1d   :  { %670 = vsyncadd [#allocation4], 4294966272 }
  0x1e   :  { %671 = dma.done.wait [#allocation7], 16384  }
  0x1f   :  { %672 = vsyncadd [#allocation7], 4294950912  ;;  %v178_v0 = vld [vmem:[#allocation6 + $0x3c8] sm:$0xff]  ;;  %v180_v1 = vld [vmem:[#allocation6 + $0x3d8] sm:$0xff]  ;;  %v681_v18 = vmov 1983009808   ;;  %v200_v20 = vlaneseq }
  0x20   :  { %v177_v2 = vld [vmem:[#allocation6 + $0x3c0] sm:$0xff]  ;;  %273 = vmatprep.subr.mxu0 %v178_v0  ;;  %343 = vmatprep.subr.mxu1 %v180_v1  ;;  %v179_v3 = vld [vmem:[#allocation6 + $0x3d0] sm:$0xff]  ;;  %v170_v4 = vld [vmem:[#allocation6 + $0x388] sm:$0xff]  ;;  %v198_v19 = vunpack.c.l.s4 %v681_v18 }
  0x21   :  { %v172_v5 = vld [vmem:[#allocation6 + $0x398] sm:$0xff]  ;;  %274 = vmatpush1.xpose.msra.mxu0 %v177_v2  ;;  %344 = vmatpush1.xpose.msra.mxu1 %v179_v3  ;;  %v169_v6 = vld [vmem:[#allocation6 + $0x380] sm:$0xff]  ;;  %v171_v7 = vld [vmem:[#allocation6 + $0x390] sm:$0xff]  ;;  %v201_v26 = vshrl.u32 %v200_v20, 7 }
  0x22   :  { %275 = vmatprep.subr.mxu0 %v170_v4  ;;  %345 = vmatprep.subr.mxu1 %v172_v5  ;;  %v162_v8 = vld [vmem:[#allocation6 + $0x348] sm:$0xff]  ;;  %v164_v9 = vld [vmem:[#allocation6 + $0x358] sm:$0xff]  ;;  %v161_v10 = vld [vmem:[#allocation6 + $0x340] sm:$0xff]  ;;  %v199_v25 = vunpack.c.0.s8 %v198_v19 }
  0x23   :  { %v163_v11 = vld [vmem:[#allocation6 + $0x350] sm:$0xff]  ;;  %v154_v12 = vld [vmem:[#allocation6 + $0x308] sm:$0xff]  ;;  %v156_v13 = vld [vmem:[#allocation6 + $0x318] sm:$0xff] }
  0x24   :  { %v153_v14 = vld [vmem:[#allocation6 + $0x300] sm:$0xff]  ;;  %v155_v15 = vld [vmem:[#allocation6 + $0x310] sm:$0xff]  ;;  %v146_v16 = vld [vmem:[#allocation6 + $0x2c8] sm:$0xff]  ;;  %v711_v31 = vsub.s32 %v199_v25, %v201_v26 }
  0x25   :  { %276 = vmatpush1.xpose.msra.mxu0 %v169_v6  ;;  %346 = vmatpush1.xpose.msra.mxu1 %v171_v7  ;;  %v148_v17 = vld [vmem:[#allocation6 + $0x2d8] sm:$0xff]  ;;  %v145_v21 = vld [vmem:[#allocation6 + $0x2c0] sm:$0xff]  ;;  %v147_v22 = vld [vmem:[#allocation6 + $0x2d0] sm:$0xff] }
  0x26   :  { %277 = vmatprep.subr.mxu0 %v162_v8  ;;  %347 = vmatprep.subr.mxu1 %v164_v9  ;;  %v138_v23 = vld [vmem:[#allocation6 + $0x288] sm:$0xff]  ;;  %v140_v24 = vld [vmem:[#allocation6 + $0x298] sm:$0xff]  ;;  %v137_v27 = vld [vmem:[#allocation6 + $0x280] sm:$0xff] }
  0x27   :  { %v139_v28 = vld [vmem:[#allocation6 + $0x290] sm:$0xff]  ;;  %v130_v29 = vld [vmem:[#allocation6 + $0x248] sm:$0xff]  ;;  %v132_v30 = vld [vmem:[#allocation6 + $0x258] sm:$0xff] }
  0x28   :  { %v129_v32 = vld [vmem:[#allocation6 + $0x240] sm:$0xff]  ;;  %v131_v33 = vld [vmem:[#allocation6 + $0x250] sm:$0xff]  ;;  %v122_v38 = vld [vmem:[#allocation6 + $0x208] sm:$0xff] }
  0x29   :  { %278 = vmatpush1.xpose.msra.mxu0 %v161_v10  ;;  %348 = vmatpush1.xpose.msra.mxu1 %v163_v11  ;;  %v597_v34 = vld [vmem:[#allocation3] ss:$16 sps:$4 sm:$0xff]   ;;  %v601_v36 = vld [vmem:[#allocation3 + $0x4] ss:$16 sps:$4 sm:$0xff]   ;;  %v124_v39 = vld [vmem:[#allocation6 + $0x218] sm:$0xff] }
  0x2a   :  { %279 = vmatprep.subr.mxu0 %v154_v12  ;;  %349 = vmatprep.subr.mxu1 %v156_v13  ;;  %v599_v35 = vld [vmem:[#allocation3 + $0x20] ss:$16 sps:$4 sm:$0xff]   ;;  %v602_v37 = vld [vmem:[#allocation3 + $0x24] ss:$16 sps:$4 sm:$0xff]   ;;  %v714_v40 = vrot.slane %v597_v34, %v711_v31  ;;  %v720_v42 = vrot.slane %v601_v36, %v711_v31  ;;  %v114_v48 = vld [vmem:[#allocation6 + $0x1c8] sm:$0xff] }
  0x2b   :  { %v717_v41 = vrot.slane %v599_v35, %v711_v31  ;;  %v723_v43 = vrot.slane %v602_v37, %v711_v31  ;;  %v121_v44 = vld [vmem:[#allocation6 + $0x200] sm:$0xff]  ;;  %v123_v45 = vld [vmem:[#allocation6 + $0x210] sm:$0xff]  ;;  %v116_v49 = vld [vmem:[#allocation6 + $0x1d8] sm:$0xff] }
  0x2c   :  { %v113_v50 = vld [vmem:[#allocation6 + $0x1c0] sm:$0xff]  ;;  %v115_v51 = vld [vmem:[#allocation6 + $0x1d0] sm:$0xff]  ;;  %v106_v52 = vld [vmem:[#allocation6 + $0x188] sm:$0xff] }
  0x2d   :  { %280 = vmatpush1.xpose.msra.mxu0 %v153_v14  ;;  %350 = vmatpush1.xpose.msra.mxu1 %v155_v15  ;;  %v226_v46 = vcombine.high %v714_v40, %v717_v41  ;;  %v228_v47 = vcombine.high %v720_v42, %v723_v43  ;;  %v108_v53 = vld [vmem:[#allocation6 + $0x198] sm:$0xff]  ;;  %v105_v54 = vld [vmem:[#allocation6 + $0x180] sm:$0xff]  ;;  %v107_v55 = vld [vmem:[#allocation6 + $0x190] sm:$0xff]  ;;  %v225_v26 = vcombine.low %v714_v40, %v717_v41 }
  0x2e   :  { %281 = vmatprep.subr.mxu0 %v146_v16  ;;  %351 = vmatprep.subr.mxu1 %v148_v17  ;;  %v98_v56 = vld [vmem:[#allocation6 + $0x148] sm:$0xff]  ;;  %v100_v57 = vld [vmem:[#allocation6 + $0x158] sm:$0xff]  ;;  %v97_v58 = vld [vmem:[#allocation6 + $0x140] sm:$0xff] }
  0x2f   :  { %337 = vmatprep.mubr.f32.mxu0 %v226_v46  ;;  %407 = vmatprep.mubr.f32.mxu1 %v228_v47  ;;  %v99_v59 = vld [vmem:[#allocation6 + $0x150] sm:$0xff]  ;;  %v90_v60 = vld [vmem:[#allocation6 + $0x108] sm:$0xff]  ;;  %v92_v61 = vld [vmem:[#allocation6 + $0x118] sm:$0xff] }
  0x30   :  { %v89_v62 = vld [vmem:[#allocation6 + $0x100] sm:$0xff]  ;;  %v91_v63 = vld [vmem:[#allocation6 + $0x110] sm:$0xff]  ;;  %v82_v0 = vld [vmem:[#allocation6 + $0xc8] sm:$0xff] }
  0x31   :  { %282 = vmatpush1.xpose.msra.mxu0 %v145_v21  ;;  %352 = vmatpush1.xpose.msra.mxu1 %v147_v22  ;;  %v84_v1 = vld [vmem:[#allocation6 + $0xd8] sm:$0xff]  ;;  %v81_v2 = vld [vmem:[#allocation6 + $0xc0] sm:$0xff]  ;;  %v83_v3 = vld [vmem:[#allocation6 + $0xd0] sm:$0xff] }
  0x32   :  { %283 = vmatprep.subr.mxu0 %v138_v23  ;;  %353 = vmatprep.subr.mxu1 %v140_v24  ;;  %v74_v4 = vld [vmem:[#allocation6 + $0x88] sm:$0xff]  ;;  %v76_v5 = vld [vmem:[#allocation6 + $0x98] sm:$0xff]  ;;  %v73_v6 = vld [vmem:[#allocation6 + $0x80] sm:$0xff] }
  0x33   :  { %v75_v7 = vld [vmem:[#allocation6 + $0x90] sm:$0xff]  ;;  %v66_v8 = vld [vmem:[#allocation6 + $0x48] sm:$0xff]  ;;  %v68_v9 = vld [vmem:[#allocation6 + $0x58] sm:$0xff] }
  0x34   :  { %v65_v10 = vld [vmem:[#allocation6 + $0x40] sm:$0xff]  ;;  %v67_v11 = vld [vmem:[#allocation6 + $0x50] sm:$0xff]  ;;  %v58_v12 = vld [vmem:[#allocation6 + $0x8] sm:$0xff] }
  0x35   :  { %284 = vmatpush1.xpose.msra.mxu0 %v137_v27  ;;  %354 = vmatpush1.xpose.msra.mxu1 %v139_v28  ;;  %v60_v13 = vld [vmem:[#allocation6 + $0x18] sm:$0xff]  ;;  %v57_v18 = vld [vmem:[#allocation6] sm:$0xff]  ;;  %v59_v19 = vld [vmem:[#allocation6 + $0x10] sm:$0xff]  ;;  %v227_v27 = vcombine.low %v720_v42, %v723_v43 }
  0x36   :  { %285 = vmatprep.subr.mxu0 %v130_v29  ;;  %355 = vmatprep.subr.mxu1 %v132_v30  ;;  %v603_v14 = vld [vmem:[#allocation3 + $0x8] ss:$16 sps:$4 sm:$0xff]   ;;  %v607_v16 = vld [vmem:[#allocation3 + $0xc] ss:$16 sps:$4 sm:$0xff]   ;;  %v181_v28 = vld [vmem:[#allocation6 + $0x3e0] sm:$0xff] }
  0x37   :  { %v605_v15 = vld [vmem:[#allocation3 + $0x28] ss:$16 sps:$4 sm:$0xff]   ;;  %v608_v17 = vld [vmem:[#allocation3 + $0x2c] ss:$16 sps:$4 sm:$0xff]   ;;  %v730_v22 = vrot.slane %v603_v14, %v711_v31  ;;  %v736_v24 = vrot.slane %v607_v16, %v711_v31  ;;  %v183_v29 = vld [vmem:[#allocation6 + $0x3f0] sm:$0xff] }
  0x38   :  { %v182_v20 = vld [vmem:[#allocation6 + $0x3e8] sm:$0xff]  ;;  %v184_v21 = vld [vmem:[#allocation6 + $0x3f8] sm:$0xff]  ;;  %v733_v23 = vrot.slane %v605_v15, %v711_v31  ;;  %v739_v25 = vrot.slane %v608_v17, %v711_v31  ;;  %v173_v34 = vld [vmem:[#allocation6 + $0x3a0] sm:$0xff] }
  0x39   :  { %286 = vmatpush1.xpose.msra.mxu0 %v129_v32  ;;  %356 = vmatpush1.xpose.msra.mxu1 %v131_v33  ;;  %v174_v30 = vld [vmem:[#allocation6 + $0x3a8] sm:$0xff]  ;;  %v176_v32 = vld [vmem:[#allocation6 + $0x3b8] sm:$0xff]  ;;  %v175_v35 = vld [vmem:[#allocation6 + $0x3b0] sm:$0xff] }
  0x3a   :  { %287 = vmatprep.subr.mxu0 %v122_v38  ;;  %357 = vmatprep.subr.mxu1 %v124_v39  ;;  %v262_v33 = vcombine.high %v730_v22, %v733_v23  ;;  %v264_v31 = vcombine.high %v736_v24, %v739_v25  ;;  %v166_v36 = vld [vmem:[#allocation6 + $0x368] sm:$0xff]  ;;  %v168_v37 = vld [vmem:[#allocation6 + $0x378] sm:$0xff]  ;;  %v165_v38 = vld [vmem:[#allocation6 + $0x360] sm:$0xff] }
  0x3b   :  { %v167_v39 = vld [vmem:[#allocation6 + $0x370] sm:$0xff]  ;;  %v158_v40 = vld [vmem:[#allocation6 + $0x328] sm:$0xff]  ;;  %v160_v41 = vld [vmem:[#allocation6 + $0x338] sm:$0xff] }
  0x3c   :  { %v157_v42 = vld [vmem:[#allocation6 + $0x320] sm:$0xff]  ;;  %v159_v43 = vld [vmem:[#allocation6 + $0x330] sm:$0xff]  ;;  %v78_v16 = vld [vmem:[#allocation6 + $0xa8] sm:$0xff] }
  0x3d   :  { %288 = vmatpush1.xpose.msra.mxu0 %v121_v44  ;;  %358 = vmatpush1.xpose.msra.mxu1 %v123_v45  ;;  %v150_v44 = vld [vmem:[#allocation6 + $0x2e8] sm:$0xff]  ;;  %v152_v45 = vld [vmem:[#allocation6 + $0x2f8] sm:$0xff]  ;;  %v149_v46 = vld [vmem:[#allocation6 + $0x2e0] sm:$0xff] }
  0x3e   :  { %289 = vmatprep.subr.mxu0 %v114_v48  ;;  %359 = vmatprep.subr.mxu1 %v116_v49  ;;  %v151_v47 = vld [vmem:[#allocation6 + $0x2f0] sm:$0xff]  ;;  %v142_v48 = vld [vmem:[#allocation6 + $0x2a8] sm:$0xff]  ;;  %v144_v49 = vld [vmem:[#allocation6 + $0x2b8] sm:$0xff] }
  0x3f   :  { %v85_v14 = vld [vmem:[#allocation6 + $0xe0] sm:$0xff]  ;;  %v87_v15 = vld [vmem:[#allocation6 + $0xf0] sm:$0xff]  ;;  %v80_v17 = vld [vmem:[#allocation6 + $0xb8] sm:$0xff] }
  0x41   :  { %290 = vmatpush1.xpose.msra.mxu0 %v113_v50  ;;  %360 = vmatpush1.xpose.msra.mxu1 %v115_v51  ;;  %v141_v50 = vld [vmem:[#allocation6 + $0x2a0] sm:$0xff]  ;;  %v143_v51 = vld [vmem:[#allocation6 + $0x2b0] sm:$0xff] }
  0x42   :  { %291 = vmatprep.subr.mxu0 %v106_v52  ;;  %361 = vmatprep.subr.mxu1 %v108_v53  ;;  %v134_v52 = vld [vmem:[#allocation6 + $0x268] sm:$0xff]  ;;  %v136_v53 = vld [vmem:[#allocation6 + $0x278] sm:$0xff] }
  0x45   :  { %292 = vmatpush1.xpose.msra.mxu0 %v105_v54  ;;  %362 = vmatpush1.xpose.msra.mxu1 %v107_v55  ;;  %v133_v54 = vld [vmem:[#allocation6 + $0x260] sm:$0xff]  ;;  %v135_v55 = vld [vmem:[#allocation6 + $0x270] sm:$0xff] }
  0x46   :  { %293 = vmatprep.subr.mxu0 %v98_v56  ;;  %363 = vmatprep.subr.mxu1 %v100_v57  ;;  %v126_v56 = vld [vmem:[#allocation6 + $0x228] sm:$0xff]  ;;  %v128_v57 = vld [vmem:[#allocation6 + $0x238] sm:$0xff] }
  0x49   :  { %294 = vmatpush1.xpose.msra.mxu0 %v97_v58  ;;  %364 = vmatpush1.xpose.msra.mxu1 %v99_v59  ;;  %v125_v58 = vld [vmem:[#allocation6 + $0x220] sm:$0xff]  ;;  %v127_v59 = vld [vmem:[#allocation6 + $0x230] sm:$0xff] }
  0x4a   :  { %295 = vmatprep.subr.mxu0 %v90_v60  ;;  %365 = vmatprep.subr.mxu1 %v92_v61  ;;  %v118_v60 = vld [vmem:[#allocation6 + $0x1e8] sm:$0xff]  ;;  %v120_v61 = vld [vmem:[#allocation6 + $0x1f8] sm:$0xff] }
  0x4d   :  { %296 = vmatpush1.xpose.msra.mxu0 %v89_v62  ;;  %366 = vmatpush1.xpose.msra.mxu1 %v91_v63  ;;  %v117_v62 = vld [vmem:[#allocation6 + $0x1e0] sm:$0xff]  ;;  %v119_v63 = vld [vmem:[#allocation6 + $0x1f0] sm:$0xff] }
  0x4e   :  { %297 = vmatprep.subr.mxu0 %v82_v0  ;;  %367 = vmatprep.subr.mxu1 %v84_v1  ;;  %v110_v0 = vld [vmem:[#allocation6 + $0x1a8] sm:$0xff]  ;;  %v112_v1 = vld [vmem:[#allocation6 + $0x1b8] sm:$0xff] }
  0x51   :  { %298 = vmatpush1.xpose.msra.mxu0 %v81_v2  ;;  %368 = vmatpush1.xpose.msra.mxu1 %v83_v3  ;;  %v109_v2 = vld [vmem:[#allocation6 + $0x1a0] sm:$0xff]  ;;  %v111_v3 = vld [vmem:[#allocation6 + $0x1b0] sm:$0xff] }
  0x52   :  { %299 = vmatprep.subr.mxu0 %v74_v4  ;;  %369 = vmatprep.subr.mxu1 %v76_v5  ;;  %v102_v4 = vld [vmem:[#allocation6 + $0x168] sm:$0xff]  ;;  %v104_v5 = vld [vmem:[#allocation6 + $0x178] sm:$0xff] }
  0x55   :  { %300 = vmatpush1.xpose.msra.mxu0 %v73_v6  ;;  %370 = vmatpush1.xpose.msra.mxu1 %v75_v7  ;;  %v101_v6 = vld [vmem:[#allocation6 + $0x160] sm:$0xff]  ;;  %v103_v7 = vld [vmem:[#allocation6 + $0x170] sm:$0xff] }
  0x56   :  { %301 = vmatprep.subr.mxu0 %v66_v8  ;;  %371 = vmatprep.subr.mxu1 %v68_v9  ;;  %v94_v8 = vld [vmem:[#allocation6 + $0x128] sm:$0xff]  ;;  %v96_v9 = vld [vmem:[#allocation6 + $0x138] sm:$0xff] }
  0x59   :  { %302 = vmatpush1.xpose.msra.mxu0 %v65_v10  ;;  %372 = vmatpush1.xpose.msra.mxu1 %v67_v11  ;;  %v93_v10 = vld [vmem:[#allocation6 + $0x120] sm:$0xff]  ;;  %v95_v11 = vld [vmem:[#allocation6 + $0x130] sm:$0xff] }
  0x5a   :  { %303 = vmatprep.subr.mxu0 %v58_v12  ;;  %373 = vmatprep.subr.mxu1 %v60_v13  ;;  %v86_v12 = vld [vmem:[#allocation6 + $0xe8] sm:$0xff]  ;;  %v88_v13 = vld [vmem:[#allocation6 + $0xf8] sm:$0xff] }
  0x5d   :  { %304 = vmatpush1.xpose.msra.mxu0 %v57_v18  ;;  %374 = vmatpush1.xpose.msra.mxu1 %v59_v19  ;;  %v77_v18 = vld [vmem:[#allocation6 + $0xa0] sm:$0xff]  ;;  %v79_v19 = vld [vmem:[#allocation6 + $0xb0] sm:$0xff] }
  0x5e   :  { %413 = vmatprep.subr.mxu0 %v182_v20  ;;  %483 = vmatprep.subr.mxu1 %v184_v21  ;;  %v70_v20 = vld [vmem:[#allocation6 + $0x68] sm:$0xff]  ;;  %v72_v21 = vld [vmem:[#allocation6 + $0x78] sm:$0xff] }
  0x60   :  { %338 = vmatmul.mubr.f32.vlgmr.msra.gmra.mxu0 %v225_v26  ;;  %408 = vmatmul.mubr.f32.vlgmr.msra.gmra.mxu1 %v227_v27  ;;  %v69_v26 = vld [vmem:[#allocation6 + $0x60] sm:$0xff]  ;;  %v71_v27 = vld [vmem:[#allocation6 + $0x70] sm:$0xff] }
  0x61   :  { %414 = vmatpush1.xpose.msra.mxu0 %v181_v28  ;;  %484 = vmatpush1.xpose.msra.mxu1 %v183_v29  ;;  %v62_v28 = vld [vmem:[#allocation6 + $0x28] sm:$0xff]  ;;  %v64_v29 = vld [vmem:[#allocation6 + $0x38] sm:$0xff] }
  0x62   :  { %415 = vmatprep.subr.mxu0 %v174_v30  ;;  %485 = vmatprep.subr.mxu1 %v176_v32  ;;  %v61_v30 = vld [vmem:[#allocation6 + $0x20] sm:$0xff]  ;;  %v63_v32 = vld [vmem:[#allocation6 + $0x30] sm:$0xff] }
  0x63   :  { %477 = vmatprep.mubr.f32.mxu0 %v262_v33  ;;  %547 = vmatprep.mubr.f32.mxu1 %v264_v31  ;;  %v261_v33 = vcombine.low %v730_v22, %v733_v23  ;;  %v263_v31 = vcombine.low %v736_v24, %v739_v25 }
  0x65   :  { %416 = vmatpush1.xpose.msra.mxu0 %v173_v34  ;;  %486 = vmatpush1.xpose.msra.mxu1 %v175_v35 }
  0x66   :  { %417 = vmatprep.subr.mxu0 %v166_v36  ;;  %487 = vmatprep.subr.mxu1 %v168_v37 }
  0x69   :  { %418 = vmatpush1.xpose.msra.mxu0 %v165_v38  ;;  %488 = vmatpush1.xpose.msra.mxu1 %v167_v39 }
  0x6a   :  { %419 = vmatprep.subr.mxu0 %v158_v40  ;;  %489 = vmatprep.subr.mxu1 %v160_v41 }
  0x6d   :  { %420 = vmatpush1.xpose.msra.mxu0 %v157_v42  ;;  %490 = vmatpush1.xpose.msra.mxu1 %v159_v43  ;;  %v586_v42 = vld [vmem:[%s761_s2] ss:$0 sm:$0xff] }
  0x6e   :  { %421 = vmatprep.subr.mxu0 %v150_v44  ;;  %491 = vmatprep.subr.mxu1 %v152_v45 }
  0x71   :  { %422 = vmatpush1.xpose.msra.mxu0 %v149_v46  ;;  %492 = vmatpush1.xpose.msra.mxu1 %v151_v47 }
  0x72   :  { %423 = vmatprep.subr.mxu0 %v142_v48  ;;  %493 = vmatprep.subr.mxu1 %v144_v49 }
  0x75   :  { %424 = vmatpush1.xpose.msra.mxu0 %v141_v50  ;;  %494 = vmatpush1.xpose.msra.mxu1 %v143_v51 }
  0x76   :  { %425 = vmatprep.subr.mxu0 %v134_v52  ;;  %495 = vmatprep.subr.mxu1 %v136_v53 }
  0x79   :  { %426 = vmatpush1.xpose.msra.mxu0 %v133_v54  ;;  %496 = vmatpush1.xpose.msra.mxu1 %v135_v55 }
  0x7a   :  { %427 = vmatprep.subr.mxu0 %v126_v56  ;;  %497 = vmatprep.subr.mxu1 %v128_v57 }
  0x7d   :  { %428 = vmatpush1.xpose.msra.mxu0 %v125_v58  ;;  %498 = vmatpush1.xpose.msra.mxu1 %v127_v59 }
  0x7e   :  { %429 = vmatprep.subr.mxu0 %v118_v60  ;;  %499 = vmatprep.subr.mxu1 %v120_v61 }
  0x81   :  { %430 = vmatpush1.xpose.msra.mxu0 %v117_v62  ;;  %500 = vmatpush1.xpose.msra.mxu1 %v119_v63 }
  0x82   :  { %431 = vmatprep.subr.mxu0 %v110_v0  ;;  %501 = vmatprep.subr.mxu1 %v112_v1 }
  0x85   :  { %432 = vmatpush1.xpose.msra.mxu0 %v109_v2  ;;  %502 = vmatpush1.xpose.msra.mxu1 %v111_v3 }
  0x86   :  { %433 = vmatprep.subr.mxu0 %v102_v4  ;;  %503 = vmatprep.subr.mxu1 %v104_v5 }
  0x89   :  { %434 = vmatpush1.xpose.msra.mxu0 %v101_v6  ;;  %504 = vmatpush1.xpose.msra.mxu1 %v103_v7 }
  0x8a   :  { %435 = vmatprep.subr.mxu0 %v94_v8  ;;  %505 = vmatprep.subr.mxu1 %v96_v9 }
  0x8d   :  { %436 = vmatpush1.xpose.msra.mxu0 %v93_v10  ;;  %506 = vmatpush1.xpose.msra.mxu1 %v95_v11 }
  0x8e   :  { %437 = vmatprep.subr.mxu0 %v86_v12  ;;  %507 = vmatprep.subr.mxu1 %v88_v13 }
  0x91   :  { %438 = vmatpush1.xpose.msra.mxu0 %v85_v14  ;;  %508 = vmatpush1.xpose.msra.mxu1 %v87_v15 }
  0x92   :  { %439 = vmatprep.subr.mxu0 %v78_v16  ;;  %509 = vmatprep.subr.mxu1 %v80_v17 }
  0x95   :  { %440 = vmatpush1.xpose.msra.mxu0 %v77_v18  ;;  %510 = vmatpush1.xpose.msra.mxu1 %v79_v19 }
  0x96   :  { %441 = vmatprep.subr.mxu0 %v70_v20  ;;  %511 = vmatprep.subr.mxu1 %v72_v21 }
  0x99   :  { %442 = vmatpush1.xpose.msra.mxu0 %v69_v26  ;;  %512 = vmatpush1.xpose.msra.mxu1 %v71_v27 }
  0x9a   :  { %443 = vmatprep.subr.mxu0 %v62_v28  ;;  %513 = vmatprep.subr.mxu1 %v64_v29 }
  0x9d   :  { %444 = vmatpush1.xpose.msra.mxu0 %v61_v30  ;;  %514 = vmatpush1.xpose.msra.mxu1 %v63_v32 }
  0xa0   :  { %478 = vmatmul.mubr.f32.vlgmr.msra.gmra.mxu0 %v261_v33  ;;  %548 = vmatmul.mubr.f32.vlgmr.msra.gmra.mxu1 %v263_v31 }
 0x120   :  { %v339_v34 = vpop.f32.mrf.mxu0  ;;  %v409_v35 = vpop.f32.mrf.mxu1 }
 0x121   :  { %v410_v38 = vadd.f32 %v409_v35, %v339_v34 }
 0x122   :  { %v341_v36 = vpop.f32.mrf.mxu0  ;;  %v411_v37 = vpop.f32.mrf.mxu1 }
 0x160   :  { %v479_v39 = vpop.f32.mrf.mxu0  ;;  %v549_v40 = vpop.f32.mrf.mxu1 }
 0x161   :  { %v480_v41 = vadd.f32 %v479_v39, %v410_v38 }
 0x162   :  { %v481_v22 = vpop.f32.mrf.mxu0  ;;  %v551_v23 = vpop.f32.mrf.mxu1 }
 0x163   :  { %v550_v43 = vadd.f32 %v549_v40, %v480_v41 }
 0x165   :  { %v566_v24 = vadd.f32 %v586_v42, %v550_v43 }
 0x167   :  { %567 = vst [vmem:[#allocation8] sm:$0xff] %v566_v24 }
 0x168   :  { %572 = vsyncadd [#allocation5], 96  ;;  %s682_s27 = smov [#allocation8]  }
 0x169   :  { %s573_s28 = sshll.u32 %s682_s27, 4  ;;  %s574_s28 = int_to_ptr.vmem [resolvable:$true] %s573_s28 }
 0x16a   :  { %s649_s29 = scalar_lea.vmem %s574_s28, 32  ;;  %s653_s30 = scalar_lea.vmem %s574_s28, 128 }
 0x16b   :  { %p650_p10 = scmp.ne.s32.totalorder %s574_s28, %s649_s29  ;;  %p654_p11 = scmp.lt.s32.totalorder %s574_s28, %s574_s28 }
 0x16c   :  { %p655_p12 = scmp.lt.s32.totalorder %s653_s30, %s649_s29 }
 0x16e   :  { %p656_p13 = por %p655_p12, %p654_p11 }
 0x170   :  { %p657_p0 = pnand %p656_p13, %p650_p10 }
 0x172   :  { %660 = shalt.err (!%p657_p0)
}
 0x173   :  { %s683_s4 = smov 32   ;;  %s684_s5 = smov 2  }
 0x174   :  { %579 = dma.vmem_to_hbm [thread:$0]  %s574_s28, 32, %s762_s3, [#allocation5], %s683_s4, %s683_s4, %s684_s5  }
 0x175   :  { %673 = dma.done.wait [#allocation5], 128  }
 0x176   :  { %674 = vsyncadd [#allocation5], 4294967168 }
 0x177   :  { %583 = vsyncpa [#allocation4], 1 }
 0x178   :  { %584 = vsyncpa [#allocation7], 1 }
 0x179   :  { %585 = vsyncpa [#allocation5], 1 }

</bundles_post_ra>
